<compile_context>
chip_gen: v7x
topology: tpu7x:2x2x1
jax: 0.10.0
libtpu: 0.0.40
codegen_flags: <defaults>
</compile_context>

<pallas_src>
import functools

import jax
import jax.numpy as jnp
from jax import lax
from jax.experimental import pallas as pl
from jax.experimental.pallas import tpu as pltpu


# ----------------------------------------------------------------------------
# Helpers
# ----------------------------------------------------------------------------
def _padded_hw(H, W):
    # Replicates the (quirky) PyTorch padding rule exactly.
    if H % 32 != 0 or W % 32 != 0:
        return 32 - H % 32 + H, 32 - W % 32 + W
    return H, W


def _pick_row_tile(H, Hp):
    # Row tile for the preprocessing kernel: must divide Hp; prefer one that
    # also divides H so input blocks never overrun the source image.
    for th in (128, 64, 32, 16, 8):
        if Hp % th == 0 and H % th == 0:
            return th
    for th in (128, 64, 32, 16, 8):
        if Hp % th == 0 and th <= H:
            return th
    return 8


def _pick_tile(n, candidates):
    for c in candidates:
        if n % c == 0:
            return c
    return n  # TODO(synk): unreachable while padded dims stay 32-divisible.


_VMEM_LIMIT = 32 * 1024 * 1024  # safe on v5e/v6e/v7x; tiles sized well below.


# ----------------------------------------------------------------------------
# Preprocessing kernel: normalize, trimap threshold, concat, pad-to-32 (bf16).
# ----------------------------------------------------------------------------
def _preprocess_kernel(img_ref, tri_ref, mean_ref, inv_std_ref, out_ref, *,
                       H, apply_fg_threshold, mask_rows):
    _, _, th, W = img_ref.shape
    Wp = out_ref.shape[3]

    if mask_rows:
        row0 = pl.program_id(1) * th
        row_ok = (row0 + lax.broadcasted_iota(jnp.int32, (th, 1), 0)) < H

    def finalize(v):
        # Assemble the full (th, Wp) row in registers so the store is a single
        # lane-dense write (no masked partial-lane stores).
        if W < Wp:
            v = jnp.concatenate(
                [v, jnp.zeros((th, Wp - W), jnp.float32)], axis=-1)
        if mask_rows:
            v = jnp.where(row_ok, v, 0.0)
        return v.astype(out_ref.dtype)

    # Normalized image channels: each output element written exactly once.
    for c in range(3):
        plane = (img_ref[0, c].astype(jnp.float32) - mean_ref[c]) * inv_std_ref[c]
        out_ref[0, c] = finalize(plane)

    tri = tri_ref[0, 0].astype(jnp.float32)
    if apply_fg_threshold:
        # trimap < 85 -> 0 ; 85 <= trimap < 170 -> 0.5 ; trimap >= 170 -> 1
        tri = jnp.where(tri >= 170.0, 1.0,
                        jnp.where(tri >= 85.0, 0.5, 0.0))
    out_ref[0, 3] = finalize(tri)


def preprocess_inputs(image, trimap, pixel_mean, pixel_std, *, has_fg):
    B, _, H, W = image.shape
    Hp, Wp = _padded_hw(H, W)

    mean = jnp.asarray(pixel_mean, jnp.float32).reshape(3)
    inv_std = (1.0 / jnp.asarray(pixel_std, jnp.float32)).reshape(3)

    th = _pick_row_tile(H, Hp)
    n_in_blocks = pl.cdiv(H, th)
    mask_rows = (Hp != H) or (H % th != 0)

    def in_row(b, r):
        # Clamp so pad-row tiles re-read the last valid input tile (masked
        # to zero inside the kernel).
        return (b, 0, jnp.minimum(r, n_in_blocks - 1), 0)

    kernel = functools.partial(_preprocess_kernel, H=H,
                               apply_fg_threshold=has_fg, mask_rows=mask_rows)
    images = pl.pallas_call(
        kernel,
        out_shape=jax.ShapeDtypeStruct((B, 4, Hp, Wp), jnp.bfloat16),
        grid=(B, Hp // th),
        in_specs=[
            pl.BlockSpec((1, 3, th, W), in_row),
            pl.BlockSpec((1, 1, th, W), in_row),
            pl.BlockSpec(memory_space=pltpu.MemorySpace.SMEM),
            pl.BlockSpec(memory_space=pltpu.MemorySpace.SMEM),
        ],
        out_specs=pl.BlockSpec((1, 4, th, Wp), lambda b, r: (b, 0, r, 0)),
        compiler_params=pltpu.CompilerParams(
            dimension_semantics=("parallel", "parallel"),
            vmem_limit_bytes=_VMEM_LIMIT),
    )(image, trimap, mean, inv_std)
    return images, H, W


# ----------------------------------------------------------------------------
# Synthetic backbone (ViT patch embed, bf16 MXU + GELU) with the decoder's
# feature head folded in: the full (M, D) feature tensor never hits HBM.
# ----------------------------------------------------------------------------
def _embed_head_kernel(x_ref, w_ref, b_ref, wf_ref, o_ref):
    # (tm, K) bf16 @ (K, D) bf16 -> f32 accumulation on the MXU.
    tok = jnp.dot(x_ref[...], w_ref[...], preferred_element_type=jnp.float32)
    tok = jax.nn.gelu(tok + b_ref[...], approximate=True)
    # Folded decoder feature head: VPU multiply + XLU lane reduce -> (tm, 1).
    o_ref[...] = jnp.sum(tok * wf_ref[...], axis=1, keepdims=True)


def backbone_feature_head(images, params, *, patch=4):
    B, C, Hp, Wp = images.shape
    gh, gw = Hp // patch, Wp // patch

    # Patchify to the matmul-ready (tokens, C*patch*patch) layout; bf16 source
    # halves this pass's HBM traffic.
    # TODO(synk): the (C,patch,patch)->K relayout stays as a single XLA op;
    # the lane-decimating transpose has no robust in-kernel Mosaic lowering.
    x = images.reshape(B, C, gh, patch, gw, patch)
    x = x.transpose(0, 2, 4, 1, 3, 5).reshape(B * gh * gw, C * patch * patch)

    w = params["w_embed"].astype(jnp.bfloat16)
    b = params["b_embed"].astype(jnp.float32).reshape(1, -1)
    D = w.shape[1]
    wf = params["w_dec"][:D, 0].astype(jnp.float32).reshape(1, D)

    M, K = x.shape
    tm = _pick_tile(M, (8192, 4096, 2048, 1024, 512, 256, 128, 64))

    fp = pl.pallas_call(
        _embed_head_kernel,
        out_shape=jax.ShapeDtypeStruct((M, 1), jnp.float32),
        grid=(M // tm,),
        in_specs=[
            pl.BlockSpec((tm, K), lambda i: (i, 0)),
            pl.BlockSpec((K, D), lambda i: (0, 0)),
            pl.BlockSpec((1, D), lambda i: (0, 0)),
            pl.BlockSpec((1, D), lambda i: (0, 0)),
        ],
        out_specs=pl.BlockSpec((tm, 1), lambda i: (i, 0)),
        compiler_params=pltpu.CompilerParams(
            dimension_semantics=("parallel",),
            vmem_limit_bytes=_VMEM_LIMIT),
    )(x, w, b, wf)
    return fp.reshape(B, gh, gw)  # per-token head projection map


# ----------------------------------------------------------------------------
# Synthetic decoder: fused nearest-x4 upsample + image FMAs + sigmoid.
# ----------------------------------------------------------------------------
def _decoder_kernel(fp_ref, img_ref, uh_ref, uw_ref, wimg_ref, bias_ref,
                    out_ref):
    _, C, th, Wp = img_ref.shape

    # Nearest x patch upsample of the folded feature-head map via one-hot
    # matmuls (MXU, bf16 with f32 accumulation). Width-expand last so the
    # dominant matmul works on the small (tr, gw) matrix first.
    fp = fp_ref[0].astype(jnp.bfloat16)                          # (tr, gw)
    wide = jnp.dot(fp, uw_ref[...],
                   preferred_element_type=jnp.float32)           # (tr, Wp)
    up = jnp.dot(uh_ref[...], wide.astype(jnp.bfloat16),
                 preferred_element_type=jnp.float32)             # (th, Wp)

    # Image half of the 1x1 head: 4 scalar-broadcast FMAs (fused "concat").
    acc = up + bias_ref[0]
    for c in range(C):
        acc = acc + img_ref[0, c].astype(jnp.float32) * wimg_ref[c]
    out_ref[0, 0] = jax.nn.sigmoid(acc)                          # lane-dense


def decoder(fp_map, images, params):
    B, gh, gw = fp_map.shape
    _, C, Hp, Wp = images.shape
    patch = Hp // gh
    D = params["w_embed"].shape[1]

    wimg = params["w_dec"][D:, 0].astype(jnp.float32)            # (C,)
    bias = params["b_dec"].reshape(-1)[:1].astype(jnp.float32)

    # gh is always a multiple of 8 (Hp % 32 == 0); take the largest of 32/16/8
    # that divides it. VMEM per step stays well under the 32 MiB limit.
    tr = next(t for t in (32, 16, 8) if gh % t == 0)
    th = tr * patch

    # One-hot upsample matrices, built once on host and kept resident in VMEM
    # across grid steps (constant index_map) instead of per-step iota builds.
    uh = (jnp.arange(th)[:, None] // patch ==
          jnp.arange(tr)[None, :]).astype(jnp.bfloat16)          # (th, tr)
    uw = (jnp.arange(gw)[:, None] ==
          jnp.arange(Wp)[None, :] // patch).astype(jnp.bfloat16)  # (gw, Wp)

    phas = pl.pallas_call(
        _decoder_kernel,
        out_shape=jax.ShapeDtypeStruct((B, 1, Hp, Wp), jnp.float32),
        grid=(B, Hp // th),
        in_specs=[
            pl.BlockSpec((1, tr, gw), lambda b, r: (b, r, 0)),
            pl.BlockSpec((1, C, th, Wp), lambda b, r: (b, 0, r, 0)),
            pl.BlockSpec((th, tr), lambda b, r: (0, 0)),
            pl.BlockSpec((gw, Wp), lambda b, r: (0, 0)),
            pl.BlockSpec(memory_space=pltpu.MemorySpace.SMEM),
            pl.BlockSpec(memory_space=pltpu.MemorySpace.SMEM),
        ],
        out_specs=pl.BlockSpec((1, 1, th, Wp), lambda b, r: (b, 0, r, 0)),
        compiler_params=pltpu.CompilerParams(
            dimension_semantics=("parallel", "parallel"),
            vmem_limit_bytes=_VMEM_LIMIT),
    )(fp_map, images, uh, uw, wimg, bias)
    return {"phas": phas}


# ----------------------------------------------------------------------------
# ViTMatte forward (inference: criterion is None => training == False).
# ----------------------------------------------------------------------------
def vitmatte_forward(batched_inputs, params, pixel_mean, pixel_std):
    images, H, W = preprocess_inputs(
        batched_inputs["image"], batched_inputs["trimap"],
        pixel_mean, pixel_std, has_fg=("fg" in batched_inputs))
    fp_map = backbone_feature_head(images, params)
    outputs = decoder(fp_map, images, params)
    outputs["phas"] = outputs["phas"][:, :, :H, :W]
    return outputs


# ----------------------------------------------------------------------------
# Pure-JAX reference (original concat / repeat formulation) for validation.
# ----------------------------------------------------------------------------
def _reference_forward(batched_inputs, params, pixel_mean, pixel_std, *, patch=4):
    image = batched_inputs["image"].astype(jnp.float32)
    trimap = batched_inputs["trimap"].astype(jnp.float32)
    B, _, H, W = image.shape
    norm = (image - pixel_mean.reshape(1, 3, 1, 1)) / pixel_std.reshape(1, 3, 1, 1)
    tri = trimap
    if "fg" in batched_inputs:
        tri = jnp.where(tri >= 170.0, 1.0,
                        jnp.where(tri >= 85.0, 0.5, 0.0))
    x = jnp.concatenate([norm, tri], axis=1)
    Hp, Wp = _padded_hw(H, W)
    imgs = jnp.zeros((B, 4, Hp, Wp), jnp.float32).at[:, :, :H, :W].set(x)

    gh, gw = Hp // patch, Wp // patch
    tok = imgs.reshape(B, 4, gh, patch, gw, patch).transpose(0, 2, 4, 1, 3, 5)
    tok = tok.reshape(B * gh * gw, 4 * patch * patch)
    feats = jnp.dot(tok.astype(jnp.bfloat16),
                    params["w_embed"].astype(jnp.bfloat16),
                    preferred_element_type=jnp.float32) + params["b_embed"]
    feats = jax.nn.gelu(feats, approximate=True).reshape(B, gh, gw, -1)

    up = jnp.repeat(jnp.repeat(feats, patch, axis=1), patch, axis=2)
    img_nhwc = imgs.transpose(0, 2, 3, 1)
    xcat = jnp.concatenate([up, img_nhwc], axis=-1)
    phas = jax.nn.sigmoid(xcat @ params["w_dec"] + params["b_dec"])
    return phas.transpose(0, 3, 1, 2)[:, :, :H, :W]


if __name__ == "__main__":
    key = jax.random.PRNGKey(0)
    k_img, k_tri, k_emb, k_dec, k_fg = jax.random.split(key, 5)

    B, H, W = 2, 16, 16          # H, W not multiples of 32 -> exercises padding
    patch, D = 4, 32

    image = jax.random.uniform(k_img, (B, 3, H, W), jnp.float32, 0.0, 255.0)
    trimap = jax.random.uniform(k_tri, (B, 1, H, W), jnp.float32, 0.0, 255.0)
    fg = jax.random.uniform(k_fg, (B, 3, H, W), jnp.float32)  # triggers thresholding

    pixel_mean = jnp.array([123.675, 116.28, 103.53], jnp.float32)
    pixel_std = jnp.array([58.395, 57.12, 57.375], jnp.float32)

    params = {
        "w_embed": 0.02 * jax.random.normal(k_emb, (4 * patch * patch, D), jnp.float32),
        "b_embed": jnp.zeros((D,), jnp.float32),
        "w_dec": 0.02 * jax.random.normal(k_dec, (D + 4, 1), jnp.float32),
        "b_dec": jnp.zeros((1,), jnp.float32),
    }

    batched_inputs = {"image": image, "trimap": trimap, "fg": fg}
    outputs = vitmatte_forward(batched_inputs, params, pixel_mean, pixel_std)
    phas = jax.block_until_ready(outputs["phas"])

    assert phas.shape == (B, 1, H, W), phas.shape
    assert bool(jnp.all(jnp.isfinite(phas)))

    ref = _reference_forward(batched_inputs, params, pixel_mean, pixel_std,
                             patch=patch)
    # Tolerance loosened slightly vs the all-f32 path: padded images and the
    # upsample matmuls run in bf16 (the token path rounding is unchanged).
    max_err = float(jnp.max(jnp.abs(phas - ref)))
    assert max_err < 3e-3, max_err

    print("KERNEL_OK")
</pallas_src>

<mosaic_0001>
module attributes {stable_mosaic.version = 11 : i64} {
  func.func @_preprocess_kernel(%arg0: i32, %arg1: i32, %arg2: memref<1x3x16x16xf32, #tpu.memory_space<vmem>>, %arg3: memref<1x1x16x16xf32, #tpu.memory_space<vmem>>, %arg4: memref<3xf32, #tpu.memory_space<smem>>, %arg5: memref<3xf32, #tpu.memory_space<smem>>, %arg6: memref<1x4x16x32xbf16, #tpu.memory_space<vmem>>) attributes {dimension_semantics = [#tpu.dimension_semantics<parallel>, #tpu.dimension_semantics<parallel>], iteration_bounds = array<i64: 2, 2>, scalar_prefetch = 0 : i64, scratch_operands = 0 : i64, tpu.core_type = #tpu.core_type<tc>, window_params = [{transform_indices = @transform_0, window_bounds = array<i64: 1, 3, 16, 16>}, {transform_indices = @transform_1, window_bounds = array<i64: 1, 1, 16, 16>}, {transform_indices = @transform_2, window_bounds = array<i64: 3>}, {transform_indices = @transform_3, window_bounds = array<i64: 3>}, {transform_indices = @transform_4, window_bounds = array<i64: 1, 4, 16, 32>}]} {
    %c16_i32 = arith.constant 16 : i32
    %0 = arith.muli %arg1, %c16_i32 : i32
    %1 = tpu.iota {dimensions = array<i32: 0>} : vector<16x1xi32>
    %2 = vector.broadcast %0 : i32 to vector<16x1xi32>
    %3 = arith.addi %2, %1 : vector<16x1xi32>
    %c16_i32_0 = arith.constant 16 : i32
    %4 = vector.broadcast %c16_i32_0 : i32 to vector<16x1xi32>
    %5 = arith.cmpi slt, %3, %4 : vector<16x1xi32>
    %c0 = arith.constant 0 : index
    %c0_1 = arith.constant 0 : index
    %c0_2 = arith.constant 0 : index
    %c0_3 = arith.constant 0 : index
    %6 = vector.load %arg2[%c0, %c0_1, %c0_2, %c0_3] : memref<1x3x16x16xf32, #tpu.memory_space<vmem>>, vector<1x1x16x16xf32>
    %7 = vector.shape_cast %6 : vector<1x1x16x16xf32> to vector<16x16xf32>
    %c0_4 = arith.constant 0 : index
    %8 = memref.load %arg4[%c0_4] : memref<3xf32, #tpu.memory_space<smem>>
    %9 = vector.broadcast %8 : f32 to vector<16x16xf32>
    %10 = arith.subf %7, %9 : vector<16x16xf32>
    %c0_5 = arith.constant 0 : index
    %11 = memref.load %arg5[%c0_5] : memref<3xf32, #tpu.memory_space<smem>>
    %12 = vector.broadcast %11 : f32 to vector<16x16xf32>
    %13 = arith.mulf %10, %12 : vector<16x16xf32>
    %cst = arith.constant 0.000000e+00 : f32
    %14 = vector.broadcast %cst : f32 to vector<16x16xf32>
    %15 = tpu.concatenate %13, %14 in 1 : vector<16x16xf32>, vector<16x16xf32> -> vector<16x32xf32>
    %cst_6 = arith.constant 0.000000e+00 : f32
    %16 = vector.shape_cast %5 : vector<16x1xi1> to vector<16x1xi1>
    %17 = vector.broadcast %16 : vector<16x1xi1> to vector<16x32xi1>
    %18 = vector.broadcast %cst_6 : f32 to vector<16x32xf32>
    %19 = arith.select %17, %15, %18 : vector<16x32xi1>, vector<16x32xf32>
    %20 = arith.truncf %19 : vector<16x32xf32> to vector<16x32xbf16>
    %c0_7 = arith.constant 0 : index
    %c0_8 = arith.constant 0 : index
    %c0_9 = arith.constant 0 : index
    %c0_10 = arith.constant 0 : index
    %21 = vector.load %arg6[%c0_7, %c0_8, %c0_9, %c0_10] : memref<1x4x16x32xbf16, #tpu.memory_space<vmem>>, vector<1x1x16x32xbf16>
    %22 = vector.shape_cast %21 : vector<1x1x16x32xbf16> to vector<16x32xbf16>
    %23 = vector.shape_cast %20 : vector<16x32xbf16> to vector<1x1x16x32xbf16>
    tpu.vector_store %arg6[%c0_7, %c0_8, %c0_9, %c0_10], %23 {strides = array<i32>} : memref<1x4x16x32xbf16, #tpu.memory_space<vmem>>, vector<1x1x16x32xbf16>,
    %c0_11 = arith.constant 0 : index
    %c1 = arith.constant 1 : index
    %c0_12 = arith.constant 0 : index
    %c0_13 = arith.constant 0 : index
    %24 = vector.load %arg2[%c0_11, %c1, %c0_12, %c0_13] : memref<1x3x16x16xf32, #tpu.memory_space<vmem>>, vector<1x1x16x16xf32>
    %25 = vector.shape_cast %24 : vector<1x1x16x16xf32> to vector<16x16xf32>
    %c1_14 = arith.constant 1 : index
    %26 = memref.load %arg4[%c1_14] : memref<3xf32, #tpu.memory_space<smem>>
    %27 = vector.broadcast %26 : f32 to vector<16x16xf32>
    %28 = arith.subf %25, %27 : vector<16x16xf32>
    %c1_15 = arith.constant 1 : index
    %29 = memref.load %arg5[%c1_15] : memref<3xf32, #tpu.memory_space<smem>>
    %30 = vector.broadcast %29 : f32 to vector<16x16xf32>
    %31 = arith.mulf %28, %30 : vector<16x16xf32>
    %cst_16 = arith.constant 0.000000e+00 : f32
    %32 = vector.broadcast %cst_16 : f32 to vector<16x16xf32>
    %33 = tpu.concatenate %31, %32 in 1 : vector<16x16xf32>, vector<16x16xf32> -> vector<16x32xf32>
    %cst_17 = arith.constant 0.000000e+00 : f32
    %34 = vector.shape_cast %5 : vector<16x1xi1> to vector<16x1xi1>
    %35 = vector.broadcast %34 : vector<16x1xi1> to vector<16x32xi1>
    %36 = vector.broadcast %cst_17 : f32 to vector<16x32xf32>
    %37 = arith.select %35, %33, %36 : vector<16x32xi1>, vector<16x32xf32>
    %38 = arith.truncf %37 : vector<16x32xf32> to vector<16x32xbf16>
    %c0_18 = arith.constant 0 : index
    %c1_19 = arith.constant 1 : index
    %c0_20 = arith.constant 0 : index
    %c0_21 = arith.constant 0 : index
    %39 = vector.load %arg6[%c0_18, %c1_19, %c0_20, %c0_21] : memref<1x4x16x32xbf16, #tpu.memory_space<vmem>>, vector<1x1x16x32xbf16>
    %40 = vector.shape_cast %39 : vector<1x1x16x32xbf16> to vector<16x32xbf16>
    %41 = vector.shape_cast %38 : vector<16x32xbf16> to vector<1x1x16x32xbf16>
    tpu.vector_store %arg6[%c0_18, %c1_19, %c0_20, %c0_21], %41 {strides = array<i32>} : memref<1x4x16x32xbf16, #tpu.memory_space<vmem>>, vector<1x1x16x32xbf16>,
    %c0_22 = arith.constant 0 : index
    %c2 = arith.constant 2 : index
    %c0_23 = arith.constant 0 : index
    %c0_24 = arith.constant 0 : index
    %42 = vector.load %arg2[%c0_22, %c2, %c0_23, %c0_24] : memref<1x3x16x16xf32, #tpu.memory_space<vmem>>, vector<1x1x16x16xf32>
    %43 = vector.shape_cast %42 : vector<1x1x16x16xf32> to vector<16x16xf32>
    %c2_25 = arith.constant 2 : index
    %44 = memref.load %arg4[%c2_25] : memref<3xf32, #tpu.memory_space<smem>>
    %45 = vector.broadcast %44 : f32 to vector<16x16xf32>
    %46 = arith.subf %43, %45 : vector<16x16xf32>
    %c2_26 = arith.constant 2 : index
    %47 = memref.load %arg5[%c2_26] : memref<3xf32, #tpu.memory_space<smem>>
    %48 = vector.broadcast %47 : f32 to vector<16x16xf32>
    %49 = arith.mulf %46, %48 : vector<16x16xf32>
    %cst_27 = arith.constant 0.000000e+00 : f32
    %50 = vector.broadcast %cst_27 : f32 to vector<16x16xf32>
    %51 = tpu.concatenate %49, %50 in 1 : vector<16x16xf32>, vector<16x16xf32> -> vector<16x32xf32>
    %cst_28 = arith.constant 0.000000e+00 : f32
    %52 = vector.shape_cast %5 : vector<16x1xi1> to vector<16x1xi1>
    %53 = vector.broadcast %52 : vector<16x1xi1> to vector<16x32xi1>
    %54 = vector.broadcast %cst_28 : f32 to vector<16x32xf32>
    %55 = arith.select %53, %51, %54 : vector<16x32xi1>, vector<16x32xf32>
    %56 = arith.truncf %55 : vector<16x32xf32> to vector<16x32xbf16>
    %c0_29 = arith.constant 0 : index
    %c2_30 = arith.constant 2 : index
    %c0_31 = arith.constant 0 : index
    %c0_32 = arith.constant 0 : index
    %57 = vector.load %arg6[%c0_29, %c2_30, %c0_31, %c0_32] : memref<1x4x16x32xbf16, #tpu.memory_space<vmem>>, vector<1x1x16x32xbf16>
    %58 = vector.shape_cast %57 : vector<1x1x16x32xbf16> to vector<16x32xbf16>
    %59 = vector.shape_cast %56 : vector<16x32xbf16> to vector<1x1x16x32xbf16>
    tpu.vector_store %arg6[%c0_29, %c2_30, %c0_31, %c0_32], %59 {strides = array<i32>} : memref<1x4x16x32xbf16, #tpu.memory_space<vmem>>, vector<1x1x16x32xbf16>,
    %c0_33 = arith.constant 0 : index
    %c0_34 = arith.constant 0 : index
    %c0_35 = arith.constant 0 : index
    %c0_36 = arith.constant 0 : index
    %60 = vector.load %arg3[%c0_33, %c0_34, %c0_35, %c0_36] : memref<1x1x16x16xf32, #tpu.memory_space<vmem>>, vector<1x1x16x16xf32>
    %61 = vector.shape_cast %60 : vector<1x1x16x16xf32> to vector<16x16xf32>
    %cst_37 = arith.constant 1.700000e+02 : f32
    %62 = vector.broadcast %cst_37 : f32 to vector<16x16xf32>
    %63 = arith.cmpf oge, %61, %62 : vector<16x16xf32>
    %cst_38 = arith.constant 8.500000e+01 : f32
    %64 = vector.broadcast %cst_38 : f32 to vector<16x16xf32>
    %65 = arith.cmpf oge, %61, %64 : vector<16x16xf32>
    %cst_39 = arith.constant 5.000000e-01 : f32
    %cst_40 = arith.constant 0.000000e+00 : f32
    %66 = vector.broadcast %cst_39 : f32 to vector<16x16xf32>
    %67 = vector.broadcast %cst_40 : f32 to vector<16x16xf32>
    %68 = arith.select %65, %66, %67 : vector<16x16xi1>, vector<16x16xf32>
    %cst_41 = arith.constant 1.000000e+00 : f32
    %69 = vector.broadcast %cst_41 : f32 to vector<16x16xf32>
    %70 = arith.select %63, %69, %68 : vector<16x16xi1>, vector<16x16xf32>
    %cst_42 = arith.constant 0.000000e+00 : f32
    %71 = vector.broadcast %cst_42 : f32 to vector<16x16xf32>
    %72 = tpu.concatenate %70, %71 in 1 : vector<16x16xf32>, vector<16x16xf32> -> vector<16x32xf32>
    %cst_43 = arith.constant 0.000000e+00 : f32
    %73 = vector.shape_cast %5 : vector<16x1xi1> to vector<16x1xi1>
    %74 = vector.broadcast %73 : vector<16x1xi1> to vector<16x32xi1>
    %75 = vector.broadcast %cst_43 : f32 to vector<16x32xf32>
    %76 = arith.select %74, %72, %75 : vector<16x32xi1>, vector<16x32xf32>
    %77 = arith.truncf %76 : vector<16x32xf32> to vector<16x32xbf16>
    %c0_44 = arith.constant 0 : index
    %c3 = arith.constant 3 : index
    %c0_45 = arith.constant 0 : index
    %c0_46 = arith.constant 0 : index
    %78 = vector.load %arg6[%c0_44, %c3, %c0_45, %c0_46] : memref<1x4x16x32xbf16, #tpu.memory_space<vmem>>, vector<1x1x16x32xbf16>
    %79 = vector.shape_cast %78 : vector<1x1x16x32xbf16> to vector<16x32xbf16>
    %80 = vector.shape_cast %77 : vector<16x32xbf16> to vector<1x1x16x32xbf16>
    tpu.vector_store %arg6[%c0_44, %c3, %c0_45, %c0_46], %80 {strides = array<i32>} : memref<1x4x16x32xbf16, #tpu.memory_space<vmem>>, vector<1x1x16x32xbf16>,
    return
  }
  func.func @transform_0(%arg0: i32, %arg1: i32) -> (i32, i32, i32, i32) {
    %c0_i32 = arith.constant 0 : i32
    %0 = arith.minsi %arg1, %c0_i32 : i32
    %c0_i32_0 = arith.constant 0 : i32
    %c0_i32_1 = arith.constant 0 : i32
    %c0_i32_2 = arith.constant 0 : i32
    return %arg0, %c0_i32_0, %0, %c0_i32_1 : i32, i32, i32, i32
  }
  func.func @transform_1(%arg0: i32, %arg1: i32) -> (i32, i32, i32, i32) {
    %c0_i32 = arith.constant 0 : i32
    %0 = arith.minsi %arg1, %c0_i32 : i32
    %c0_i32_0 = arith.constant 0 : i32
    %c0_i32_1 = arith.constant 0 : i32
    %c0_i32_2 = arith.constant 0 : i32
    return %arg0, %c0_i32_0, %0, %c0_i32_1 : i32, i32, i32, i32
  }
  func.func @transform_2(%arg0: i32, %arg1: i32) -> i32 {
    %c0_i32 = arith.constant 0 : i32
    %c0_i32_0 = arith.constant 0 : i32
    return %c0_i32 : i32
  }
  func.func @transform_3(%arg0: i32, %arg1: i32) -> i32 {
    %c0_i32 = arith.constant 0 : i32
    %c0_i32_0 = arith.constant 0 : i32
    return %c0_i32 : i32
  }
  func.func @transform_4(%arg0: i32, %arg1: i32) -> (i32, i32, i32, i32) {
    %c0_i32 = arith.constant 0 : i32
    %c0_i32_0 = arith.constant 0 : i32
    %c0_i32_1 = arith.constant 0 : i32
    return %arg0, %c0_i32, %arg1, %c0_i32_0 : i32, i32, i32, i32
  }
}

</mosaic_0001>

<bundles_post_ra>
// kernel: tpu_custom_call.1
= control target key start
LH: loop header
LB: loop body
LE: loop exit
PB: predicated region body
PF: predicated region fallthrough
CT: control target
= control target key end

     0   :  { %s1442_s0 = inlined_call_operand.hbm [shape: f32[2,3,16,16], index: 0, kind: input, shape index: {}]   ;;  %s1443_s1 = inlined_call_operand.hbm [shape: f32[2,1,16,16], index: 1, kind: input, shape index: {}]   ;;  %s1444_s2 = inlined_call_operand.vmem [shape: f32[3], index: 2, kind: input, shape index: {}]   ;;  %s1445_s3 = inlined_call_operand.vmem [shape: f32[3], index: 3, kind: input, shape index: {}]   ;;  %s1446_s4 = inlined_call_operand.hbm [shape: bf16[2,4,32,32], index: 4, kind: output, shape index: {}]  }
   0x1   :  { %1458 = sst [smem:[#allocation25_spill]] %s1442_s0 }
   0x2   :  { %1459 = sst [smem:[#allocation26_spill]] %s1444_s2 }
   0x3   :  { %1460 = sst [smem:[#allocation27_spill]] %s1445_s3 }
   0x4   :  { %9 = vsyncpa [#allocation3], 0 }
   0x5   :  { %11 = vsyncpa [#allocation3 + $0x1], 0 }
   0x6   :  { %12 = vsyncpa [#allocation7], 0 }
   0x7   :  { %14 = vsyncpa [#allocation7 + $0x1], 0 }
   0x8   :  { %15 = vsyncpa [#allocation5], 0 }
   0x9   :  { %16 = vsyncpa [#allocation10], 0 }
   0xa   :  { %17 = vsyncpa [#allocation4], 0 }
   0xb   :  { %19 = vsyncpa [#allocation4 + $0x1], 0  ;;  %s1063_s15 = smov 0   ;;  %s1065_s16 = smov 0  }
   0xc   :  { %s1067_s17 = smov 0   ;;  %s1069_s18 = smov 0  }
   0xd   :  { %s1071_s19 = smov 0   ;;  %s1073_s20 = smov 0  }
   0xe   :  { %s1075_s21 = smov 0   ;;  %s1077_s22 = smov 0  }
   0xf   :  { %s1079_s23 = smov 0   ;;  %s1081_s24 = smov 0  }
  0x10   :  { %s1083_s25 = smov 0  }
  0x11 LB: > { %1461 = sst [smem:[#allocation19_spill]] %s982_s15  ;;  %s623_s26 = sadd.s32 4294967295, %s1022_s25   ;;  %s1022_s25 = sphi %s1083_s25, %s25_s25   ;;  %s1018_s24 = sphi %s1081_s24, %s1497_s24   ;;  %s1014_s23 = sphi %s1079_s23, %s1488_s23   ;;  %s1010_s22 = sphi %s1077_s22, %s1496_s22   ;;  %s1006_s21 = sphi %s1075_s21, %s1487_s21   ;;  %s1002_s20 = sphi %s1073_s20, %s1495_s20   ;;  %s998_s19 = sphi %s1071_s19, %s1494_s19   ;;  %s994_s18 = sphi %s1069_s18, %s1493_s18   ;;  %s990_s17 = sphi %s1067_s17, %s1492_s17   ;;  %s986_s16 = sphi %s1065_s16, %s1491_s16   ;;  %s982_s15 = sphi %s1063_s15, %s1490_s15  }
  0x12   : > { %1462 = sst [smem:[#allocation20_spill]] %s1014_s23  ;;  %s624_s27 = sadd.s32 4294967294, %s1022_s25  }
  0x13   : > { %s50_s28 = sadd.s32 1, %s1002_s20  ;;  %p57_p0 = scmp.ne.s32.totalorder %s1002_s20, %s998_s19 }
  0x14   : > { %p58_p1 = scmp.eq.s32.totalorder %s1022_s25, 0  ;;  %p63_p2 = scmp.ne.s32.totalorder %s998_s19, %s994_s18 }
  0x15   : > { %p1123_p3 = scmp.eq.s32.totalorder %s623_s26, 0  ;;  %s152_s30 = sadd.s32 1, %s990_s17 }
  0x16   : > { %p1128_p4 = por %p58_p1, %p57_p0  ;;  %p162_p5 = scmp.ne.s32.totalorder %s990_s17, %s986_s16 }
  0x17   : > { %s1463_s29 = scalar_select %p1123_p3, 1, 0 }
  0x18   : > { %p1136_p6 = por %p1123_p3, %p63_p2  ;;  %p163_p7 = scmp.eq.s32.totalorder %s623_s26, 3 }
  0x19   : > { %p168_p8 = scmp.ne.s32.totalorder %s986_s16, %s982_s15  ;;  %p169_p9 = scmp.eq.s32.totalorder %s624_s27, 3 }
  0x1a   : > { %s1465_s6 = scalar_select %p1136_p6, 1, 0 }
  0x1b   : > { %p1142_p10 = por %p163_p7, %p162_p5  ;;  %p625_p11 = scmp.ge.s32.totalorder %s1022_s25, 1 }
  0x1c   : > { %p1147_p12 = por %p169_p9, %p168_p8  ;;  %p176_p13 = scmp.lt.s32.totalorder %s1022_s25, 5 }
  0x1d   : > { %s1466_s7 = scalar_select %p1142_p10, 1, 0 }
  0x1e   : > { %s1467_s8 = scalar_select %p1147_p12, 1, 0 }
  0x1f   : > { %s1469_s2 = sld [smem:[#allocation26_spill]]  ;;  %p1155_p0 = pnand %p625_p11, %p176_p13 }
  0x20   : > { %1468 = sst [smem:[#allocation21_spill]] %s1467_s8  ;;  %p720_p2 = scmp.lt.s32.totalorder %s1022_s25, 4 }
  0x21   : > { %s1470_s12 = scalar_select %p1155_p0, 1, 0 }
  0x22   : > { %p700_p1 = pneg %p1155_p0  ;;  %s1471_s3 = sld [smem:[#allocation27_spill]] }
  0x23   : > { %p1173_p7 = pnand %p720_p2, %p1128_p4 }
  0x24   : > { %p1167_p5 = pnand %p700_p1, %p1123_p3 }
  0x25   : > { %s189_s11 = sshll.u32 %s1469_s2, 4  ;;  %s190_s11 = int_to_ptr.vmem [resolvable:$true] %s189_s11 }
  0x26   : > { %s1473_s27 = scalar_select %p1173_p7, 1, 0 }
  0x27   : > { %s824_s9 = scalar_lea.vmem %s190_s11, 16  ;;  %p826_p9 = pneg %p1167_p5 }
  0x28   : > { %s200_s18 = sshll.u32 %s1471_s3, 4  ;;  %p825_p8 = scmp.ne.s32.totalorder %s190_s11, %s824_s9  ;;  %s201_s18 = int_to_ptr.vmem [resolvable:$true] %s200_s18 }
  0x29   : > { %p832_p12 = scmp.lt.s32.totalorder %s190_s11, %s190_s11  ;;  %p833_p10 = scmp.lt.s32.totalorder %s824_s9, %s824_s9 }
  0x2a   : > { %p827_p11 = pnand %p826_p9, %p825_p8 }
  0x2b   : > { %p834_p6 = por %p833_p10, %p832_p12 }
  0x2c   : > { %p828_p13 = pneg %p827_p11 }
  0x2e   : > { %p835_p1 = pnand %p834_p6, %p828_p13 }
  0x30   : > { %838 = shalt.err (!%p835_p1)
}
  0x31   : > { %s1024_s10 = smov [#allocation8]   ;;  %s839_s5 = scalar_lea.vmem %s201_s18, 16 }
  0x32   : > { %703 = dma.vmem_to_smem (!%p1167_p5), %s190_s11, 16, %s1024_s10, [#allocation5]  }
  0x33   : > { %p840_p4 = scmp.ne.s32.totalorder %s201_s18, %s839_s5  ;;  %p847_p0 = scmp.lt.s32.totalorder %s201_s18, %s201_s18 }
  0x34   : > { %p848_p7 = scmp.lt.s32.totalorder %s839_s5, %s839_s5 }
  0x35   : > { %p842_p2 = pnand %p840_p4, %p826_p9 }
  0x36   : > { %p849_p8 = por %p848_p7, %p847_p0 }
  0x37   : > { %p843_p3 = pneg %p842_p2 }
  0x39   : > { %p850_p11 = pnand %p849_p8, %p843_p3 }
  0x3b   : > { %853 = shalt.err (!%p850_p11)
}
  0x3c   : > { %s1025_s13 = smov [#allocation9]   ;;  %s34_s11 = sadd.s32 1, %s1014_s23 }
  0x3d   : > { %706 = dma.vmem_to_smem (!%p1167_p5), %s201_s18, 16, %s1025_s13, [#allocation10]  }
  0x3e   : > { %p35_p6 = scmp.ge.s32.totalorder %s34_s11, 2  ;;  %s37_s14 = sadd.s32 1, %s1018_s24 }
  0x3f   : > { %s1186_s9 = sand.u32 1, %s1002_s20   ;;  %s1477_s0 = sld [smem:[#allocation25_spill]] }
  0x40   : > { %s1499_s11 = smov (%p35_p6, %s34_s11), 0  ;;  %s1501_s14 = smov (!%p35_p6, %s37_s14), %s1018_s24 }
  0x41   : > { %1474 = sst [smem:[#allocation22_spill]] %s1499_s11  ;;  %p39_p3 = scmp.ge.s32.totalorder %s1501_s14, 2 }
  0x42   : > { %s148_s26 = ssub.s32 %s1014_s23, %s1499_s11  ;;  %s677_s10 = smul.u32 48, %s1186_s9 }
  0x43   : > { %s1503_s14 = smov (%p39_p3, %s1501_s14), 0  ;;  %s978_s11 = smul.u32 768, %s1018_s24 }
  0x44   : > { %1475 = sst [smem:[#allocation23_spill]] %s1503_s14  ;;  %s45_s18 = ssub.s32 %s1018_s24, %s1503_s14 }
  0x45   : > { %s149_s5 = sor.u32 %s148_s26, %s45_s18  ;;  %p48_p12 = scmp.eq.s32.totalorder %s45_s18, 0 }
  0x46   : > { %p150_p10 = scmp.eq.s32.totalorder %s149_s5, 0  ;;  %s215_s3 = scalar_lea.vmem [#allocation2], %s677_s10 }
  0x47   : > { %s1206_s2 = scalar_select %p48_p12, %s1002_s20, %s50_s28  }
  0x48   : > { %s1201_s13 = scalar_select %p150_p10, %s990_s17, %s152_s30  }
  0x49   : > { %1476 = sst [smem:[#allocation24_spill]] %s1206_s2  ;;  %s226_s8 = sshll.u32 %s215_s3, 4  ;;  %s1208_s8 = int_to_ptr.vmem [resolvable:$true] %s226_s8 }
  0x4a   : > { %s1214_s14 = scalar_lea.hbm %s1477_s0, %s978_s11  ;;  %s212_s26 = scalar_lea.sflag [#allocation3], %s1186_s9 }
  0x4b   : > { %s854_s30 = scalar_lea.hbm %s1214_s14, 768  ;;  %p1478_p5 = scmp.ne.s32.totalorder %s1473_s27, 0 }
  0x4c   : > { %p855_p0 = scmp.ne.s32.totalorder %s1214_s14, %s854_s30  ;;  %s859_s18 = scalar_lea.hbm %s1477_s0, 1536 }
  0x4d   : > { %p856_p7 = pneg %p1478_p5  ;;  %p860_p1 = scmp.lt.u32.totalorder %s1214_s14, %s1477_s0 }
  0x4e   : > { %p861_p4 = scmp.lt.u32.totalorder %s859_s18, %s854_s30  ;;  %p863_p8 = scmp.lt.u32.totalorder %s854_s30, %s1214_s14 }
  0x4f   : > { %p857_p9 = pnand %p856_p7, %p855_p0 }
  0x50   : > { %p862_p2 = por %p861_p4, %p860_p1 }
  0x51   : > { %p858_p13 = pneg %p857_p9 }
  0x52   : > { %p864_p11 = por %p863_p8, %p862_p2 }
  0x54   : > { %p865_p6 = pnand %p864_p11, %p858_p13 }
  0x56   : > { %868 = shalt.err (!%p865_p6)
}
  0x57   : > { %s869_s11 = scalar_lea.vmem %s1208_s8, 768  ;;  %s1026_s10 = smov [#allocation2]  }
  0x58   : > { %p870_p3 = scmp.ne.s32.totalorder %s1208_s8, %s869_s11  ;;  %s874_s5 = sshll.u32 %s1026_s10, 4  ;;  %s875_s5 = int_to_ptr.vmem [resolvable:$false] %s874_s5 }
  0x59   : > { %s876_s3 = scalar_lea.vmem %s875_s5, 1536  ;;  %p877_p0 = scmp.lt.s32.totalorder %s1208_s8, %s875_s5 }
  0x5a   : > { %p872_p10 = pnand %p870_p3, %p856_p7  ;;  %p878_p9 = scmp.lt.s32.totalorder %s876_s3, %s869_s11 }
  0x5c   : > { %p873_p12 = pneg %p872_p10  ;;  %p879_p1 = por %p878_p9, %p877_p0 }
  0x5e   : > { %p880_p4 = pnand %p879_p1, %p873_p12 }
  0x60   : > { %883 = shalt.err (!%p880_p4)
}
  0x61   : > { %s1027_s30 = smov 128   ;;  %s1028_s28 = smov 8  }
  0x62   : > { %710 = dma.hbm_to_vmem [thread:$0]  (!%p1478_p5), %s1214_s14, 768, %s1208_s8, %s212_s26, %s1027_s30, %s1027_s30, %s1028_s28  }
  0x63   : > { %s631_s18 = sshll.u32 %s1186_s9, 4  ;;  %s979_s15 = sshll.u32 %s1018_s24, 8 }
  0x64   : > { %s240_s23 = scalar_lea.vmem [#allocation6], %s631_s18  ;;  %s1252_s3 = scalar_lea.hbm %s1443_s1, %s979_s15 }
  0x65   : > { %s251_s11 = sshll.u32 %s240_s23, 4  ;;  %s237_s0 = scalar_lea.sflag [#allocation7], %s1186_s9  ;;  %s1254_s11 = int_to_ptr.vmem [resolvable:$true] %s251_s11 }
  0x66   : > { %s884_s2 = scalar_lea.hbm %s1252_s3, 256  ;;  %s889_s26 = scalar_lea.hbm %s1443_s1, 512 }
  0x67   : > { %p885_p13 = scmp.ne.s32.totalorder %s1252_s3, %s884_s2  ;;  %p890_p11 = scmp.lt.u32.totalorder %s1252_s3, %s1443_s1 }
  0x68   : > { %p891_p6 = scmp.lt.u32.totalorder %s889_s26, %s884_s2  ;;  %p893_p10 = scmp.lt.u32.totalorder %s884_s2, %s1252_s3 }
  0x69   : > { %p887_p2 = pnand %p885_p13, %p856_p7 }
  0x6a   : > { %p892_p3 = por %p891_p6, %p890_p11 }
  0x6b   : > { %p888_p8 = pneg %p887_p2 }
  0x6c   : > { %p894_p12 = por %p893_p10, %p892_p3 }
  0x6e   : > { %p895_p0 = pnand %p894_p12, %p888_p8 }
  0x70   : > { %898 = shalt.err (!%p895_p0)
}
  0x71   : > { %s899_s23 = scalar_lea.vmem %s1254_s11, 256  ;;  %s1029_s10 = smov [#allocation6]  }
  0x72   : > { %p900_p9 = scmp.ne.s32.totalorder %s1254_s11, %s899_s23  ;;  %s904_s5 = sshll.u32 %s1029_s10, 4  ;;  %s905_s5 = int_to_ptr.vmem [resolvable:$false] %s904_s5 }
  0x73   : > { %s906_s8 = scalar_lea.vmem %s905_s5, 512  ;;  %p907_p13 = scmp.lt.s32.totalorder %s1254_s11, %s905_s5 }
  0x74   : > { %p902_p1 = pnand %p900_p9, %p856_p7  ;;  %p908_p2 = scmp.lt.s32.totalorder %s906_s8, %s899_s23 }
  0x76   : > { %p903_p4 = pneg %p902_p1  ;;  %p909_p11 = por %p908_p2, %p907_p13 }
  0x78   : > { %p910_p6 = pnand %p909_p11, %p903_p4 }
  0x7a   : > { %913 = shalt.err (!%p910_p6)
}
  0x7b   : > { %713 = dma.hbm_to_vmem [thread:$0]  (!%p1478_p5), %s1252_s3, 256, %s1254_s11, %s237_s0, %s1027_s30, %s1027_s30, %s1028_s28  }
  0x7c   : > { %p1479_p7 = scmp.ne.s32.totalorder %s1470_s12, 0 }
  0x7d   : > { %s265_s2 = sand.u32 (!%p1479_p7), 1, %s998_s19   ;;  %p1480_p8 = scmp.ne.s32.totalorder (!%p1479_p7), %s1465_s6, 0 }
  0x7e   : > { %263 = sbr.rel (%p1479_p7) target bundleno = 177 (0xb1), region = 36  ;;  %s266_s26 = scalar_lea.sflag (!%p1479_p7), [#allocation3], %s265_s2 }
  0x7f   : > { %s679_s14 = smul.u32 (!%p1479_p7), 48, %s265_s2 }
  0x81   : > { %s1288_s18 = scalar_lea.vmem (!%p1479_p7), [#allocation2], %s679_s14 }
  0x85   : > { %959 = dma.done.wait (%p1480_p8), %s266_s26, 768  }
  0x86   : > { %961 = vsyncadd (%p1480_p8), %s266_s26, 4294966528  ;;  %s636_s27 = sshll.u32 %s265_s2, 4  ;;  %s275_s9 = scalar_lea.sflag [#allocation7], %s265_s2 }
  0x87   : > { %s1294_s15 = scalar_lea.vmem [#allocation6], %s636_s27 }
  0x88   : > { %963 = dma.done.wait (%p1480_p8), %s275_s9, 256  }
  0x89   : > { %965 = vsyncadd (%p1480_p8), %s275_s9, 4294967040  ;;  %p1481_p5 = scmp.ne.s32.totalorder %s1463_s29, 0 }
  0x8b   : > { %967 = dma.done.wait (%p1481_p5), [#allocation5], 16  }
  0x8c   : > { %969 = vsyncadd (%p1481_p5), [#allocation5], 4294967280 }
  0x8d   : > { %971 = dma.done.wait (%p1481_p5), [#allocation10], 16  }
  0x8e   : > { %973 = vsyncadd (%p1481_p5), [#allocation10], 4294967280 }
  0x8f   : > { %291 = sfence }
  0x90   : > { %s640_s0 = sshll.u32 %s1006_s21, 4  ;;  %v325_v0 = vlaneseq  ;;  %s1309_s6 = sld [smem:[#allocation8]]  ;;  %vm343_vm0 = vcmask 130048   ;;  %v415_v3 = vld [vmem:[%s1294_s15] sm:$0xff]  ;;  %v1030_v7 = vmov 0.0   ;;  %v334_v9 = vld [vmem:[%s1288_s18 + $0x8] sm:$0xff] }
  0x91   : > { %v328_v1 = vstv %s640_s0  ;;  %s314_s12 = sand.u32 1, %s986_s16   ;;  %s1312_s30 = sld [smem:[#allocation9]]  ;;  %v333_v4 = vld [vmem:[%s1288_s18] sm:$0xff]  ;;  %vm417_vm1 = vcmp.ge.f32.partialorder %v415_v3, 170.0  ;;  %vm419_vm2 = vcmp.ge.f32.partialorder %v415_v3, 85.0  ;;  %v416_v11 = vld [vmem:[%s1294_s15 + $0x8] sm:$0xff] }
  0x92   : > { %v326_v2 = vshrl.u32 %v325_v0, 7  ;;  %s1316_s29 = sld [smem:[#allocation8 + $0x1]]  ;;  %s1322_s11 = sld [smem:[#allocation8 + $0x2]]  ;;  %v421_v8 = vsel %vm419_vm2, 0.5, %v1030_v7  ;;  %vm360_vm4 = vcmask 257024   ;;  %v643_v15 = vld [vmem:[%s1288_s18 + $0x10] sm:$0xff] }
  0x93   : > { %s1320_s28 = sld [smem:[#allocation9 + $0x1]]  ;;  %s1326_s3 = sshll.u32 %s314_s12, 5  ;;  %v423_v10 = vsel %vm417_vm1, 1.0, %v421_v8  ;;  %vm420_vm5 = vcmp.ge.f32.partialorder %v416_v11, 85.0  ;;  %v644_v20 = vld [vmem:[%s1288_s18 + $0x18] sm:$0xff]  ;;  %vm418_vm6 = vcmp.ge.f32.partialorder %v416_v11, 170.0 }
  0x94   : > { %v1318_v5 = vadd.s32 %v328_v1, %v326_v2  ;;  %v327_v6 = vadd.s32 8, %v326_v2  ;;  %s1329_s23 = sld [smem:[#allocation9 + $0x2]]  ;;  %v425_v13 = vsel %vm343_vm0, %v423_v10, 0.0  ;;  %v651_v22 = vld [vmem:[%s1288_s18 + $0x20] sm:$0xff]  ;;  %v422_v24 = vsel %vm420_vm5, 0.5, %v1030_v7  ;;  %v652_v29 = vld [vmem:[%s1288_s18 + $0x28] sm:$0xff] }
  0x95   : > { %s1347_s10 = scalar_lea.vmem [#allocation11], %s1326_s3  ;;  %v424_v33 = vsel %vm418_vm6, 1.0, %v422_v24  ;;  %s441_s5 = scalar_lea.sflag [#allocation4], %s314_s12 }
  0x96   : > { %vm331_vm3 = vcmp.lt.s32.totalorder %v1318_v5, 16  ;;  %v330_v12 = vadd.s32 %v328_v1, %v327_v6  ;;  %v336_v14 = vstv %s1309_s6  ;;  %v426_v49 = vsel %vm343_vm0, %v424_v33, 0.0 }
  0x97   : > { %v427_v16 = vsel %vm331_vm3, %v425_v13, 0.0  ;;  %v337_v17 = vsub.f32 %v333_v4, %v336_v14  ;;  %v340_v18 = vstv %s1312_s30  ;;  %v338_v19 = vsub.f32 %v334_v9, %v336_v14 }
  0x98   : > { %vm332_vm7 = vcmp.lt.s32.totalorder %v330_v12, 16  ;;  %v367_v21 = vstv %s1316_s29  ;;  %v675_v23 = vpack.c.bf16 %v427_v16, %v427_v16  ;;  %v393_v31 = vstv %s1322_s11 }
  0x99   : > { %v341_v25 = vmul.f32 %v340_v18, %v337_v17  ;;  %v342_v26 = vmul.f32 %v340_v18, %v338_v19  ;;  %v368_v27 = vsub.f32 %v643_v15, %v367_v21  ;;  %v371_v28 = vstv %s1320_s28 }
  0x9a   : > { %v369_v30 = vsub.f32 %v644_v20, %v367_v21  ;;  %v397_v32 = vstv %s1329_s23  ;;  %661 = vst.msk [vmem:[%s1347_s10 + $0x18] sm:$0xf] %vm360_vm4, %v675_v23  ;;  %v394_v37 = vsub.f32 %v651_v22, %v393_v31  ;;  %v395_v41 = vsub.f32 %v652_v29, %v393_v31 }
  0x9b   : > { %v344_v34 = vsel %vm343_vm0, %v341_v25, 0.0  ;;  %v345_v35 = vsel %vm343_vm0, %v342_v26, 0.0  ;;  %v372_v36 = vmul.f32 %v371_v28, %v368_v27  ;;  %v428_v53 = vsel %vm332_vm7, %v426_v49, 0.0 }
  0x9c   : > { %v350_v38 = vsel %vm331_vm3, %v344_v34, 0.0  ;;  %v351_v39 = vsel %vm332_vm7, %v345_v35, 0.0  ;;  %v373_v40 = vmul.f32 %v371_v28, %v369_v30  ;;  %v398_v45 = vmul.f32 %v397_v32, %v394_v37 }
  0x9d   : > { %v669_v42 = vpack.c.bf16 %v350_v38, %v350_v38  ;;  %v670_v43 = vpack.c.bf16 %v351_v39, %v351_v39  ;;  %v374_v44 = vsel %vm343_vm0, %v372_v36, 0.0  ;;  %v399_v48 = vmul.f32 %v397_v32, %v395_v41 }
  0x9e   : > { %v376_v46 = vsel %vm331_vm3, %v374_v44, 0.0  ;;  %v375_v47 = vsel %vm343_vm0, %v373_v40, 0.0  ;;  %v400_v52 = vsel %vm343_vm0, %v398_v45, 0.0  ;;  %v676_v57 = vpack.c.bf16 %v428_v53, %v428_v53 }
  0x9f   : > { %361 = vst.msk [vmem:[%s1347_s10] sm:$0xf] %vm360_vm4, %v669_v42  ;;  %362 = vst.msk [vmem:[%s1347_s10 + $0x4] sm:$0xf] %vm360_vm4, %v670_v43  ;;  %v671_v50 = vpack.c.bf16 %v376_v46, %v376_v46  ;;  %v377_v51 = vsel %vm332_vm7, %v375_v47, 0.0  ;;  %v402_v55 = vsel %vm331_vm3, %v400_v52, 0.0 }
  0xa0   : > { %v672_v54 = vpack.c.bf16 %v377_v51, %v377_v51  ;;  %v401_v56 = vsel %vm343_vm0, %v399_v48, 0.0  ;;  %v673_v58 = vpack.c.bf16 %v402_v55, %v402_v55  ;;  %662 = vst.msk [vmem:[%s1347_s10 + $0x1c] sm:$0xf] %vm360_vm4, %v676_v57 }
  0xa1   : > { %649 = vst.msk [vmem:[%s1347_s10 + $0x8] sm:$0xf] %vm360_vm4, %v671_v50  ;;  %v403_v59 = vsel %vm332_vm7, %v401_v56, 0.0 }
  0xa2   : > { %650 = vst.msk [vmem:[%s1347_s10 + $0xc] sm:$0xf] %vm360_vm4, %v672_v54  ;;  %v674_v60 = vpack.c.bf16 %v403_v59, %v403_v59  ;;  %657 = vst.msk [vmem:[%s1347_s10 + $0x10] sm:$0xf] %vm360_vm4, %v673_v58 }
  0xa4   : > { %658 = vst.msk [vmem:[%s1347_s10 + $0x14] sm:$0xf] %vm360_vm4, %v674_v60 }
  0xa5   : > { %s664_s8 = sshll.u32 %s1006_s21, 1  ;;  %s665_s2 = sshll.u32 %s1010_s22, 4 }
  0xa6   : > { %s453_s14 = sadd.s32 %s665_s2, %s664_s8  ;;  %s472_s26 = sshll.u32 %s1347_s10, 4  ;;  %s473_s26 = int_to_ptr.vmem [resolvable:$true] %s472_s26 }
  0xa7   : > { %s666_s18 = sshll.u32 %s453_s14, 6  ;;  %s1031_s0 = smov 128  }
  0xa8   : > { %s455_s15 = scalar_lea.hbm %s1446_s4, %s666_s18  ;;  %p1482_p3 = scmp.ne.s32.totalorder %s1466_s7, 0 }
  0xa9   : > { %s1032_s6 = smov 256   ;;  %s1033_s12 = smov 2  }
  0xaa   : > { %692 = sst [smem:[#allocation13]] (%p1482_p3), %s1031_s0  ;;  %s1034_s21 = smov 64  }
  0xab   : > { %693 = sst [smem:[#allocation13 + $0x1]] (%p1482_p3), %s1032_s6  ;;  %s1035_s22 = smov 4  }
  0xac   : > { %694 = sst [smem:[#allocation13 + $0x2]] (%p1482_p3), %s1033_s12  ;;  %s1036_s30 = smov [#allocation12]  }
  0xad   : > { %695 = sst [smem:[#allocation13 + $0x3]] (%p1482_p3), %s1034_s21  ;;  %s1037_s29 = smov 0  }
  0xae   : > { %696 = sst [smem:[#allocation13 + $0x4]] (%p1482_p3), %s1034_s21 }
  0xaf   : > { %697 = sst [smem:[#allocation13 + $0x5]] (%p1482_p3), %s1035_s22 }
  0xb0   : > { %698 = dma.general (%p1482_p3), %s473_s26, 512, %s455_s15, %s441_s5, %s1036_s30, [#allocation13], %s1037_s29, 0  }
  0xb1 PF: > { %s1483_s28 = sld [smem:[#allocation19_spill]]  ;;  %s1484_s11 = sld [smem:[#allocation21_spill]] }
  0xb2   : > { %p723_p10 = scmp.ge.s32.totalorder %s1022_s25, 2 }
  0xb7   : > { %s500_s3 = sand.u32 1, %s1483_s28   ;;  %p1485_p12 = scmp.ne.s32.totalorder %s1484_s11, 0 }
  0xb8   : > { %s501_s23 = scalar_lea.sflag [#allocation4], %s500_s3 }
  0xb9   : > { %p715_p0 = pnand %p723_p10, %p1485_p12 }
  0xbb   : > { %975 = dma.done.wait (!%p715_p0), %s501_s23, 512  }
  0xbc   : > { %977 = vsyncadd (!%p715_p0), %s501_s23, 4294966784  ;;  %s25_s25 = sadd.s32 1, %s1022_s25   ;;  %s1486_s7 = sld [smem:[#allocation24_spill]] }
  0xbd   : > { %p22_p9 = scmp.ge.s32.totalorder %s25_s25, 6   ;;  %s1487_s21 = sld [smem:[#allocation20_spill]] }
  0xbe   : > { %s1488_s23 = sld [smem:[#allocation22_spill]]  ;;  %s1489_s10 = sld [smem:[#allocation23_spill]] }
  0xbf   : > { %s1490_s15 = smov %s986_s16  ;;  %s1491_s16 = smov %s990_s17 }
  0xc0   : > { %s1492_s17 = smov %s1201_s13  ;;  %s1493_s18 = smov %s998_s19 }
  0xc1   : > { %s1494_s19 = smov %s1002_s20  ;;  %s1496_s22 = smov %s1018_s24 }
  0xc2   : > { %s1495_s20 = smov %s1486_s7  ;;  %24 = sbr.rel (!%p22_p9) target bundleno = 17 (0x11), region = 113 }
  0xc4   : > { %s1497_s24 = smov %s1489_s10 }
  0xc9   :  { %506 = vsyncpa [#allocation3], 1 }
  0xca   :  { %508 = vsyncpa [#allocation3 + $0x1], 1 }
  0xcb   :  { %509 = vsyncpa [#allocation7], 1 }
  0xcc   :  { %511 = vsyncpa [#allocation7 + $0x1], 1 }
  0xcd   :  { %512 = vsyncpa [#allocation4], 1 }
  0xce   :  { %514 = vsyncpa [#allocation4 + $0x1], 1 }
  0xcf   :  { %515 = vsyncpa [#allocation5], 1 }
  0xd0   :  { %517 = vsyncpa [#allocation5 + $0x1], 1 }
  0xd1   :  { %518 = vsyncpa [#allocation10], 1 }

</bundles_post_ra>
